<compile_context>
chip_gen: v5e
topology: v5e:2x2
jax: 0.10.0
libtpu: 0.0.40
codegen_flags: <defaults>
</compile_context>

<pallas_src>
import functools

import jax
import jax.numpy as jnp
from jax.experimental import pallas as pl
from jax.experimental.pallas import tpu as pltpu


def _round_up(x, m):
    return ((x + m - 1) // m) * m


def _ceil_div(a, b):
    return -(-a // b)


def _tpu_budgets():
    """(per-pipeline-set VMEM budget, scoped vmem limit) — generation aware."""
    try:
        cap = pltpu.get_tpu_info().vmem_capacity_bytes
    except Exception:
        cap = None
    if cap is None:                                   # unknown backend: be safe
        return 8 * 1024 * 1024, 32 * 1024 * 1024
    if cap >= 100 * 1024 * 1024:                      # v5e / v6e: 128 MiB VMEM
        return 16 * 1024 * 1024, 64 * 1024 * 1024
    return 12 * 1024 * 1024, 48 * 1024 * 1024         # v7x: 64 MiB per TC


def _keep_native_bf16(dtype):
    """bf16-native select only where the VPU has bf16 lanes (v6e / v7x)."""
    if dtype != jnp.bfloat16:
        return False
    try:
        kind = jax.devices()[0].device_kind.lower()
    except Exception:
        return False
    return any(t in kind for t in ("v6", "v7", "tpu7"))


# ---------------------------------------------------------------------------
# Kernel A: scores (N, C) — samples on sublanes, classes on lanes.
# Emits per-class partial sums (1, C) per row-tile.
# ---------------------------------------------------------------------------
def _hsl_rows_kernel(scores_ref, labels_ref, out_ref, *, ignore_val, n_rows,
                     tn, upcast):
    i = pl.program_id(0)
    s = scores_ref[...]                                   # (tn, C) native dtype
    if upcast:
        s = s.astype(jnp.float32)
    lab = labels_ref[...]                                  # (tn, 1) int32

    # Fold tail-bounds + ignore into the narrow label tensor (trace-time
    # specialized: nothing is emitted when not needed).
    need_tail = (n_rows % tn) != 0
    if need_tail or (ignore_val is not None):
        valid = None
        if need_tail:
            row = jax.lax.broadcasted_iota(jnp.int32, lab.shape, 0) + i * tn
            valid = row < n_rows
        if ignore_val is not None:
            keep = lab != ignore_val
            valid = keep if valid is None else (valid & keep)
        lab = jnp.where(valid, lab, -1)

    col = jax.lax.broadcasted_iota(jnp.int32, s.shape, 1)  # class id per lane
    picked = jnp.where(col == lab, s, jnp.zeros_like(s))   # select, never mul
    if picked.dtype != jnp.float32:
        picked = picked.astype(jnp.float32)                # f32 accumulation
    psum = jnp.sum(picked, axis=0, keepdims=True)          # (1, C) via XLU
    out_ref[...] = psum.reshape(out_ref.shape)


def _hsl_2d(scores, labels, cw, ignore_val, tn=None):
    N, C = scores.shape
    itemsize = jnp.dtype(scores.dtype).itemsize
    budget, vmem_limit = _tpu_budgets()
    upcast = not _keep_native_bf16(scores.dtype)

    # VMEM bytes per row of one pipeline set: lane-padded scores row +
    # lane-padded (128-wide) int32 label column.
    row_bytes = _round_up(C, 128) * itemsize + 128 * 4
    if tn is None:
        tn = max(8, budget // row_bytes)
    tn = _round_up(int(tn), 8)
    tn = min(tn, 32768)
    if N > 8:                                   # keep >=2 grid steps (megacore)
        tn = min(tn, _round_up(_ceil_div(N, 2), 8))
    if tn >= N:                                 # block dim == full dim is legal
        tn = N

    num_tiles = _ceil_div(N, tn)
    labels2 = labels.reshape(N, 1)              # free reshape
    # TODO(synk): for C <= 128 the (tn,1) label blocks lane-pad to 128 in VMEM
    # (cost is accounted for in row_bytes); a lane-dense label stream would
    # need an in-kernel lane->sublane relayout, which is not attempted here.

    out = pl.pallas_call(
        functools.partial(_hsl_rows_kernel, ignore_val=ignore_val,
                          n_rows=N, tn=tn, upcast=upcast),
        out_shape=jax.ShapeDtypeStruct((num_tiles, 1, C), jnp.float32),
        grid_spec=pltpu.PrefetchScalarGridSpec(
            num_scalar_prefetch=0,
            grid=(num_tiles,),
            in_specs=[
                pl.BlockSpec((tn, C), lambda i: (i, 0)),     # scores tile
                pl.BlockSpec((tn, 1), lambda i: (i, 0)),     # labels tile
            ],
            out_specs=pl.BlockSpec((1, 1, C), lambda i: (i, 0, 0)),
        ),
        compiler_params=pltpu.CompilerParams(
            dimension_semantics=("parallel",),
            vmem_limit_bytes=vmem_limit,
        ),
    )(scores, labels2)

    per_class = jnp.sum(out, axis=(0, 1))       # (C,) — tiny XLA reduce
    total = jnp.sum(per_class) if cw is None else jnp.sum(per_class * cw)
    return -total


# ---------------------------------------------------------------------------
# Kernel B: scores (B, C, H*W) — classes on sublanes, spatial on lanes.
# Avoids the NCHW -> NHWC transpose entirely (only free reshapes).
# ---------------------------------------------------------------------------
def _hsl_nchw_kernel(scores_ref, labels_ref, out_ref, *, ignore_val,
                     n_batch, n_hw, tb, thw, upcast):
    bi = pl.program_id(0)
    j = pl.program_id(1)
    s = scores_ref[...]                                     # (tb, C, thw)
    if upcast:
        s = s.astype(jnp.float32)
    lab = labels_ref[...]                                    # (tb, 1, thw) int32

    mask_b = (n_batch % tb) != 0
    mask_hw = (n_hw % thw) != 0
    if mask_b or mask_hw or (ignore_val is not None):
        valid = None
        if mask_b:
            bpos = jax.lax.broadcasted_iota(jnp.int32, lab.shape, 0) + bi * tb
            valid = bpos < n_batch
        if mask_hw:
            hpos = jax.lax.broadcasted_iota(jnp.int32, lab.shape, 2) + j * thw
            m = hpos < n_hw
            valid = m if valid is None else (valid & m)
        if ignore_val is not None:
            m = lab != ignore_val
            valid = m if valid is None else (valid & m)
        lab = jnp.where(valid, lab, -1)

    cls = jax.lax.broadcasted_iota(jnp.int32, s.shape, 1)    # class per sublane
    picked = jnp.where(cls == lab, s, jnp.zeros_like(s))
    if picked.dtype != jnp.float32:
        picked = picked.astype(jnp.float32)
    psum = jnp.sum(jnp.sum(picked, axis=2), axis=0, keepdims=True)  # (1, C)
    out_ref[...] = psum.reshape(out_ref.shape)


def _hsl_nchw(scores, labels, cw, ignore_val, thw=None):
    B, C, H, W = scores.shape
    HW = H * W
    itemsize = jnp.dtype(scores.dtype).itemsize
    budget, vmem_limit = _tpu_budgets()
    upcast = not _keep_native_bf16(scores.dtype)

    scores3 = scores.reshape(B, C, HW)          # free (contiguous) reshape
    labels3 = labels.reshape(B, 1, HW)          # free reshape
    # TODO(synk): for C < 8 (f32) / C < 16 (bf16) the (tb, C, thw) block
    # sublane-pads C; a flattened (B*C, HW) layout would pack denser but needs
    # an in-kernel sublane repeat of labels, which is not attempted here.

    sub = max(1, 32 // itemsize)                # sublane packing granule
    c_pad = _round_up(C, sub)
    per_col = c_pad * itemsize + 8 * 4          # scores column + padded label
    if thw is None:
        thw = budget // per_col
    thw = max(128, _round_up(int(thw), 128))
    if thw >= HW:
        thw = HW                                # block dim == full dim is legal
    if B == 1 and HW > 128:                     # >=2 grid steps when B can't split
        thw = min(thw, _round_up(_ceil_div(HW, 2), 128))
    tb = max(1, min(B, budget // max(1, thw * per_col)))
    if B >= 2:
        tb = min(tb, _ceil_div(B, 2))           # >=2 grid steps (megacore)

    nb = _ceil_div(B, tb)
    nhw = _ceil_div(HW, thw)

    out = pl.pallas_call(
        functools.partial(_hsl_nchw_kernel, ignore_val=ignore_val,
                          n_batch=B, n_hw=HW, tb=tb, thw=thw, upcast=upcast),
        out_shape=jax.ShapeDtypeStruct((nb * nhw, 1, C), jnp.float32),
        grid_spec=pltpu.PrefetchScalarGridSpec(
            num_scalar_prefetch=0,
            grid=(nb, nhw),
            in_specs=[
                pl.BlockSpec((tb, C, thw), lambda b, j: (b, 0, j)),  # scores
                pl.BlockSpec((tb, 1, thw), lambda b, j: (b, 0, j)),  # labels
            ],
            out_specs=pl.BlockSpec((1, 1, C),
                                   lambda b, j: (b * nhw + j, 0, 0)),
        ),
        compiler_params=pltpu.CompilerParams(
            dimension_semantics=("parallel", "parallel"),
            vmem_limit_bytes=vmem_limit,
        ),
    )(scores3, labels3)

    per_class = jnp.sum(out, axis=(0, 1))       # (C,)
    total = jnp.sum(per_class) if cw is None else jnp.sum(per_class * cw)
    return -total


# ---------------------------------------------------------------------------
# Public wrapper: matches HypersphericalLoss.forward semantics.
# ---------------------------------------------------------------------------
def hyperspherical_loss(scores, y, ignore_label=None, class_weights=None,
                        tile_rows=None, tile_cols=None):
    ignore_val = None if ignore_label is None else int(ignore_label)
    cw = (None if class_weights is None
          else jnp.asarray(class_weights, jnp.float32))
    labels = y.astype(jnp.int32)

    if scores.ndim == 4:
        return _hsl_nchw(scores, labels, cw, ignore_val, thw=tile_cols)
    return _hsl_2d(scores, labels, cw, ignore_val, tn=tile_rows)


# ---------------------------------------------------------------------------
# Pure-JAX reference (transcription of the torch forward) for verification.
# ---------------------------------------------------------------------------
def _reference(scores, y, ignore_label=None, class_weights=None):
    if scores.ndim == 4:
        b, c, h, w = scores.shape
        scores = jnp.transpose(scores, (0, 2, 3, 1)).reshape(b * h * w, c)
        y = y.reshape(b * h * w)
    scores = scores.astype(jnp.float32)
    y = y.astype(jnp.int32)
    loss = -jnp.take_along_axis(scores, y[:, None], axis=1)[:, 0]
    if class_weights is not None:
        loss = loss * jnp.asarray(class_weights, jnp.float32)[y]
    if ignore_label is not None:
        loss = jnp.where(y != ignore_label, loss, 0.0)
    return jnp.sum(loss)


if __name__ == "__main__":
    key = jax.random.PRNGKey(0)
    k1, k2, k3, k4 = jax.random.split(key, 4)

    # 4D conv-style input (B, C, H, W) with ignore label and class weights.
    b, c, h, w = 2, 4, 16, 16
    scores4 = jax.random.normal(k1, (b, c, h, w), dtype=jnp.float32)
    y4 = jax.random.randint(k2, (b, h, w), 0, c, dtype=jnp.int32)
    class_weights = jnp.array([1.0, 0.5, 2.0, 1.5], dtype=jnp.float32)

    out1 = hyperspherical_loss(scores4, y4, ignore_label=3,
                               class_weights=class_weights)
    ref1 = _reference(scores4, y4, 3, class_weights)
    assert jnp.allclose(out1, ref1, rtol=1e-5, atol=1e-4), (out1, ref1)

    # 4D default path (no ignore, no weights) — trace-time specialization.
    out2 = hyperspherical_loss(scores4, y4)
    ref2 = _reference(scores4, y4)
    assert jnp.allclose(out2, ref2, rtol=1e-5, atol=1e-4), (out2, ref2)

    # 2D input with a tile that does not divide N (exercises tail masking).
    n, c2 = 1000, 8
    scores2 = jax.random.normal(k3, (n, c2), dtype=jnp.float32)
    y2 = jax.random.randint(k4, (n,), 0, c2, dtype=jnp.int32)
    cw2 = jnp.linspace(0.5, 2.0, c2, dtype=jnp.float32)
    out3 = hyperspherical_loss(scores2, y2, ignore_label=2, class_weights=cw2,
                               tile_rows=128)
    ref3 = _reference(scores2, y2, 2, cw2)
    assert jnp.allclose(out3, ref3, rtol=1e-5, atol=1e-4), (out3, ref3)

    # bf16 scores stay bf16 in HBM; select stays bf16 on v6e/v7x, f32 on v5e.
    scores_bf = scores2.astype(jnp.bfloat16)
    out4 = hyperspherical_loss(scores_bf, y2)
    ref4 = _reference(scores_bf, y2)
    assert jnp.allclose(out4, ref4, rtol=1e-3, atol=1e-2), (out4, ref4)

    jax.block_until_ready((out1, out2, out3, out4))
    print("KERNEL_OK")
</pallas_src>

<mosaic_0001>
module attributes {stable_mosaic.version = 11 : i64} {
  func.func @_hsl_nchw_kernel(%arg0: i32, %arg1: i32, %arg2: memref<1x4x256xf32, #tpu.memory_space<vmem>>, %arg3: memref<1x1x256xi32, #tpu.memory_space<vmem>>, %arg4: memref<1x1x4xf32, #tpu.memory_space<vmem>>) attributes {dimension_semantics = [#tpu.dimension_semantics<parallel>, #tpu.dimension_semantics<parallel>], iteration_bounds = array<i64: 2, 1>, scalar_prefetch = 0 : i64, scratch_operands = 0 : i64, tpu.core_type = #tpu.core_type<tc>, window_params = [{transform_indices = @transform_0, window_bounds = array<i64: 1, 4, 256>}, {transform_indices = @transform_1, window_bounds = array<i64: 1, 1, 256>}, {transform_indices = @transform_2, window_bounds = array<i64: 1, 1, 4>}]} {
    %c0 = arith.constant 0 : index
    %c0_0 = arith.constant 0 : index
    %c0_1 = arith.constant 0 : index
    %0 = vector.load %arg2[%c0, %c0_0, %c0_1] : memref<1x4x256xf32, #tpu.memory_space<vmem>>, vector<1x4x256xf32>
    %c0_2 = arith.constant 0 : index
    %c0_3 = arith.constant 0 : index
    %c0_4 = arith.constant 0 : index
    %1 = vector.load %arg3[%c0_2, %c0_3, %c0_4] : memref<1x1x256xi32, #tpu.memory_space<vmem>>, vector<1x1x256xi32>
    %c3_i32 = arith.constant 3 : i32
    %2 = vector.broadcast %c3_i32 : i32 to vector<1x1x256xi32>
    %3 = arith.cmpi ne, %1, %2 : vector<1x1x256xi32>
    %c-1_i32 = arith.constant -1 : i32
    %4 = vector.broadcast %c-1_i32 : i32 to vector<1x1x256xi32>
    %5 = arith.select %3, %1, %4 : vector<1x1x256xi1>, vector<1x1x256xi32>
    %6 = tpu.iota {dimensions = array<i32: 1>} : vector<1x4x256xi32>
    %7 = vector.broadcast %5 : vector<1x1x256xi32> to vector<1x4x256xi32>
    %8 = arith.cmpi eq, %6, %7 : vector<1x4x256xi32>
    %cst = arith.constant 0.000000e+00 : f32
    %9 = vector.broadcast %cst : f32 to vector<1x4x256xf32>
    %10 = arith.select %8, %0, %9 : vector<1x4x256xi1>, vector<1x4x256xf32>
    %cst_5 = arith.constant dense<0.000000e+00> : vector<1x4xf32>
    %11 = vector.multi_reduction <add>, %10, %cst_5 [2] : vector<1x4x256xf32> to vector<1x4xf32>
    %cst_6 = arith.constant dense<0.000000e+00> : vector<4xf32>
    %12 = vector.multi_reduction <add>, %11, %cst_6 [0] : vector<1x4xf32> to vector<4xf32>
    %13 = vector.shape_cast %12 : vector<4xf32> to vector<1x4xf32>
    %14 = vector.shape_cast %13 : vector<1x4xf32> to vector<1x1x4xf32>
    %c0_7 = arith.constant 0 : index
    %c0_8 = arith.constant 0 : index
    %c0_9 = arith.constant 0 : index
    %15 = vector.load %arg4[%c0_7, %c0_8, %c0_9] : memref<1x1x4xf32, #tpu.memory_space<vmem>>, vector<1x1x4xf32>
    tpu.vector_store %arg4[%c0_7, %c0_8, %c0_9], %14 {strides = array<i32>} : memref<1x1x4xf32, #tpu.memory_space<vmem>>, vector<1x1x4xf32>,
    return
  }
  func.func @transform_0(%arg0: i32, %arg1: i32) -> (i32, i32, i32) {
    %c0_i32 = arith.constant 0 : i32
    %c0_i32_0 = arith.constant 0 : i32
    return %arg0, %c0_i32, %arg1 : i32, i32, i32
  }
  func.func @transform_1(%arg0: i32, %arg1: i32) -> (i32, i32, i32) {
    %c0_i32 = arith.constant 0 : i32
    %c0_i32_0 = arith.constant 0 : i32
    return %arg0, %c0_i32, %arg1 : i32, i32, i32
  }
  func.func @transform_2(%arg0: i32, %arg1: i32) -> (i32, i32, i32) {
    %c1_i32 = arith.constant 1 : i32
    %0 = arith.muli %arg0, %c1_i32 : i32
    %1 = arith.addi %0, %arg1 : i32
    %c0_i32 = arith.constant 0 : i32
    %c0_i32_0 = arith.constant 0 : i32
    %c0_i32_1 = arith.constant 0 : i32
    return %1, %c0_i32, %c0_i32_0 : i32, i32, i32
  }
}

</mosaic_0001>

<bundles_post_ra>
// kernel: tpu_custom_call.1
= control target key start
LH: loop header
LB: loop body
LE: loop exit
PB: predicated region body
PF: predicated region fallthrough
CT: control target
= control target key end

     0   :  { %7 = vsyncpa [#allocation3], 0  ;;  %s758_s0 = inlined_call_operand.hbm [shape: f32[2,4,256], index: 0, kind: input, shape index: {}]   ;;  %s759_s1 = inlined_call_operand.hbm [shape: s32[2,1,256], index: 1, kind: input, shape index: {}]   ;;  %s760_s2 = inlined_call_operand.hbm [shape: f32[2,1,4], index: 2, kind: output, shape index: {}]  }
   0x1   :  { %9 = vsyncpa [#allocation3 + $0x1], 0 }
   0x2   :  { %10 = vsyncpa [#allocation6], 0 }
   0x3   :  { %12 = vsyncpa [#allocation6 + $0x1], 0 }
   0x4   :  { %13 = vsyncpa [#allocation4], 0 }
   0x5   :  { %15 = vsyncpa [#allocation4 + $0x1], 0  ;;  %s619_s9 = smov 0   ;;  %s621_s10 = smov 0  }
   0x6   :  { %s623_s11 = smov 0   ;;  %s625_s12 = smov 0  }
   0x7   :  { %s627_s13 = smov 0   ;;  %s629_s14 = smov 0  }
   0x8 LB: > { %s374_s15 = sadd.s32 4294967295, %s602_s14   ;;  %s375_s16 = sadd.s32 4294967294, %s602_s14   ;;  %s602_s14 = sphi %s629_s14, %s21_s14   ;;  %s598_s13 = sphi %s627_s13, %s770_s13   ;;  %s594_s12 = sphi %s625_s12, %s769_s12   ;;  %s590_s11 = sphi %s623_s11, %s768_s11   ;;  %s586_s10 = sphi %s621_s10, %s767_s10   ;;  %s582_s9 = sphi %s619_s9, %s766_s9  }
   0x9   : > { %s33_s17 = sadd.s32 1, %s598_s13  ;;  %s42_s18 = sadd.s32 1, %s590_s11 }
   0xa   : > { %p35_p0 = scmp.ge.s32.totalorder %s33_s17, 2  ;;  %p49_p1 = scmp.ne.s32.totalorder %s590_s11, %s586_s10 }
   0xb   : > { %p50_p2 = scmp.eq.s32.totalorder %s602_s14, 0  ;;  %p55_p3 = scmp.ne.s32.totalorder %s586_s10, %s582_s9 }
   0xc   : > { %s772_s17 = smov (%p35_p0, %s33_s17), 0  ;;  %p56_p5 = scmp.eq.s32.totalorder %s374_s15, 0 }
   0xd   : > { %p660_p4 = por %p50_p2, %p49_p1  ;;  %s37_s20 = ssub.s32 %s598_s13, %s772_s17 }
   0xe   : > { %p109_p6 = scmp.eq.s32.totalorder %s374_s15, 1  ;;  %p40_p7 = scmp.eq.s32.totalorder %s37_s20, 0 }
   0xf   : > { %p666_p8 = por %p56_p5, %p55_p3  ;;  %p115_p10 = scmp.eq.s32.totalorder %s375_s16, 1 }
  0x10   : > { %p670_p9 = por %p109_p6, %p49_p1  ;;  %p377_p12 = scmp.ge.s32.totalorder %s602_s14, 2 }
  0x11   : > { %s675_s23 = scalar_select %p40_p7, %s590_s11, %s42_s18  }
  0x12   : > { %p677_p11 = por %p115_p10, %p55_p3  ;;  %p406_p13 = scmp.lt.s32.totalorder %s602_s14, 2 }
  0x13   : > { %s135_s25 = sand.u32 1, %s590_s11   ;;  %s388_s27 = sshll.u32 %s598_s13, 3 }
  0x14   : > { %s378_s26 = sshll.u32 %s135_s25, 3  ;;  %s146_s30 = scalar_lea.hbm %s758_s0, %s388_s27 }
  0x15   : > { %s139_s3 = scalar_lea.vmem [#allocation2], %s378_s26  ;;  %s148_s5 = sshll.u32 %s146_s30, 4  ;;  %s149_s5 = int_to_ptr.hbm [resolvable:$true] %s148_s5 }
  0x16   : > { %s150_s4 = sshll.u32 %s139_s3, 4  ;;  %p690_p0 = pnand %p406_p13, %p660_p4  ;;  %s151_s4 = int_to_ptr.vmem [resolvable:$true] %s150_s4 }
  0x17   : > { %p383_p1 = scmp.ge.s32.totalorder %s602_s14, 1  ;;  %p176_p2 = scmp.lt.s32.totalorder %s602_s14, 3 }
  0x18   : > { %s136_s7 = scalar_lea.sflag [#allocation3], %s135_s25  ;;  %s381_s8 = sshll.u32 %s135_s25, 1 }
  0x19   : > { %398 = dma.hbm_to_vmem [thread:$0]  (!%p690_p0), %s149_s5, 128, %s151_s4, %s136_s7  }
  0x1a   : > { %p177_p3 = pnand %p383_p1, %p176_p2  ;;  %s382_s15 = sshll.u32 %s598_s13, 1 }
  0x1b   : > { %s167_s20 = scalar_lea.hbm %s759_s1, %s382_s15  ;;  %s161_s26 = scalar_lea.vmem [#allocation5], %s381_s8 }
  0x1c   : > { %s171_s19 = sshll.u32 %s161_s26, 4  ;;  %s169_s27 = sshll.u32 %s167_s20, 4  ;;  %s172_s19 = int_to_ptr.vmem [resolvable:$true] %s171_s19  ;;  %s170_s27 = int_to_ptr.hbm [resolvable:$true] %s169_s27 }
  0x1d   : > { %s158_s28 = scalar_lea.sflag [#allocation6], %s135_s25  ;;  %180 = sbr.rel (%p177_p3) target bundleno = 172 (0xac), region = 28 }
  0x1e   : > { %401 = dma.hbm_to_vmem [thread:$0]  (!%p690_p0), %s170_s27, 32, %s172_s19, %s158_s28  }
  0x1f   : > { %s705_s29 = sand.u32 (!%p177_p3), 1, %s586_s10  }
  0x20   : > { %s384_s30 = sshll.u32 (!%p177_p3), %s705_s29, 3  ;;  %s183_s3 = scalar_lea.sflag (!%p177_p3), [#allocation3], %s705_s29 }
  0x21   : > { %s186_s4 = scalar_lea.vmem (!%p177_p3), [#allocation2], %s384_s30 }
  0x22   : > { %569 = dma.done.wait (%p666_p8), %s183_s3, 128  }
  0x23   : > { %571 = vsyncadd (%p666_p8), %s183_s3, 4294967168  ;;  %s385_s25 = sshll.u32 %s705_s29, 1  ;;  %s193_s5 = scalar_lea.sflag [#allocation6], %s705_s29 }
  0x24   : > { %s196_s6 = scalar_lea.vmem [#allocation5], %s385_s25 }
  0x25   : > { %573 = dma.done.wait (%p666_p8), %s193_s5, 32  }
  0x26   : > { %575 = vsyncadd (%p666_p8), %s193_s5, 4294967264  ;;  %v229_v0 = vlaneseq  ;;  %v225_v1 = vld [vmem:[%s186_s4] sm:$0xff]  ;;  %v226_v2 = vld [vmem:[%s196_s6] sm:$0x3]  ;;  %vm243_vm3 = vcmask 1043456   ;;  %s267_s8 = scalar_lea.hbm %s760_s2, %s594_s12  ;;  %s221_s15 = scalar_lea.vmem [#allocation7], %s705_s29 }
  0x27   : > { %236 = vst [vmem:[#allocation1] ss:$2 sm:$0xff] %v225_v1  ;;  %vm227_vm0 = vcmp.ne.s32.totalorder %v226_v2, 3  ;;  %s269_s16 = sshll.u32 %s221_s15, 4  ;;  %s271_s18 = sshll.u32 %s267_s8, 4  ;;  %vm255_vm4 = vcmask 24576   ;;  %s270_s16 = int_to_ptr.vmem [resolvable:$true] %s269_s16  ;;  %s272_s18 = int_to_ptr.hbm [resolvable:$true] %s271_s18 }
  0x28   : > { %v228_v3 = vsel %vm227_vm0, %v226_v2, 4294967295  ;;  %v230_v4 = vshrl.u32 %v229_v0, 7  ;;  %v252_v14 = vand.u32 127, %v229_v0  ;;  %s258_s20 = scalar_lea.sflag [#allocation4], %s705_s29  ;;  %s530_s26 = sshra.s32 %s272_s18, 4  ;;  %s531_s26 = int_to_ptr.hbm [resolvable:$true] %s530_s26 }
  0x29   : > { %v231_v5 = vperm.slane %v228_v3, 0  ;;  %v232_v6 = vperm.slane %v228_v3, 1  ;;  %s532_s19 = scalar_lea.hbm %s531_s26, 1  ;;  %s536_s28 = scalar_lea.hbm %s760_s2, 2 }
  0x2a   : > { %p533_p4 = scmp.ne.s32.totalorder %s531_s26, %s532_s19  ;;  %p537_p7 = scmp.lt.s32.totalorder %s531_s26, %s760_s2 }
  0x2b   : > { %vm233_vm1 = vcmp.eq.s32.totalorder %v230_v4, %v231_v5  ;;  %vm234_vm2 = vcmp.eq.s32.totalorder %v230_v4, %v232_v6  ;;  %p538_p8 = scmp.lt.s32.totalorder %s536_s28, %s532_s19 }
  0x2c   : > { %p534_p5 = pnand %p533_p4, %p670_p9 }
  0x2d   : > { %p539_p10 = por %p538_p8, %p537_p7 }
  0x2e   : > { %v237_v7 = vld.sshfl [vmem:[#allocation1] sm:$0xff pattern:$0x75316420]  ;;  %v238_v8 = vld.sshfl [vmem:[#allocation1 + $0x8] sm:$0xff pattern:$0x75316420]  ;;  %p535_p6 = pneg %p534_p5 }
  0x2f   : > { %v241_v9 = vsel %vm233_vm1, %v237_v7, 0.0  ;;  %v242_v10 = vsel %vm234_vm2, %v238_v8, 0.0 }
  0x30   : > { %v244_v11 = vsel %vm243_vm3, %v241_v9, 0.0  ;;  %v245_v12 = vsel %vm243_vm3, %v242_v10, 0.0  ;;  %p540_p13 = pnand %p539_p10, %p535_p6 }
  0x31   : > { %v246_v13 = vadd.f32 %v245_v12, %v244_v11 }
  0x33   : > { %247 = vadd.xlane.f32.xlu0 %v246_v13 }
  0xa6   : > { %v248_v15 = vpop.xlane.xlu0 %247 }
  0xa7   : > { %v253_v16 = vperm.slane %v248_v15, %v252_v14 }
  0xa9   : > { %256 = vst.msk [vmem:[%s221_s15] sm:$0x1] %vm255_vm4, %v253_v16 }
  0xaa   : > { %543 = shalt.err (!%p540_p13)
}
  0xab   : > { %393 = dma.vmem_to_hbm [thread:$0]  (%p670_p9), %s270_s16, 16, %s272_s18, %s258_s20  }
  0xac PF: > { %s283_s29 = sand.u32 1, %s582_s9   ;;  %p403_p0 = pnand %p377_p12, %p677_p11 }
  0xad   : > { %s284_s4 = scalar_lea.sflag [#allocation4], %s283_s29 }
  0xae   : > { %p404_p1 = pneg %p403_p0 }
  0xb0   : > { %577 = dma.done.wait (%p404_p1), %s284_s4, 16  }
  0xb1   : > { %579 = vsyncadd (%p404_p1), %s284_s4, 4294967280  ;;  %s21_s14 = sadd.s32 1, %s602_s14   ;;  %s766_s9 = smov %s586_s10 }
  0xb2   : > { %p18_p2 = scmp.ge.s32.totalorder %s21_s14, 4   ;;  %s767_s10 = smov %s590_s11 }
  0xb3   : > { %s768_s11 = smov %s675_s23  ;;  %s769_s12 = smov %s598_s13 }
  0xb4   : > { %s770_s13 = smov %s772_s17  ;;  %20 = sbr.rel (!%p18_p2) target bundleno = 8 (0x8), region = 86 }
  0xb9   :  { %289 = vsyncpa [#allocation3], 1 }
  0xba   :  { %291 = vsyncpa [#allocation3 + $0x1], 1 }
  0xbb   :  { %292 = vsyncpa [#allocation6], 1 }
  0xbc   :  { %294 = vsyncpa [#allocation6 + $0x1], 1 }
  0xbd   :  { %295 = vsyncpa [#allocation4], 1 }
  0xbe   :  { %297 = vsyncpa [#allocation4 + $0x1], 1 }

</bundles_post_ra>
